<compile_context>
chip_gen: v7x
topology: tpu7x:2x2x1
jax: 0.10.0
libtpu: 0.0.40
codegen_flags: <defaults>
</compile_context>

<pallas_src>
import functools

import jax
import jax.numpy as jnp
from jax.experimental import pallas as pl
from jax.experimental.pallas import tpu as pltpu


def _round_up(x, m):
    return ((x + m - 1) // m) * m


# ---------------------------------------------------------------------------
# Fused Pallas kernel
# ---------------------------------------------------------------------------
def fused_graphsage_kernel(xs_ref, nei_ref, w_ref, b_ref, o_ref, *, num_layers):
    # xs_ref : (tm, Dp)     self features                   (compute dtype, e.g. bf16)
    # nei_ref: (tm, Dp)     pre-reduced neighbor mean        (compute dtype)
    # w_ref  : (L, Dp, Dp)  aggregator weights (VMEM resident)
    # b_ref  : (L, Dp, Dp)  self weights "b"   (VMEM resident)
    # o_ref  : (tm, Dp)     output (compute dtype, same width as inputs)
    compute_dtype = xs_ref.dtype
    nei = nei_ref[...]
    h = xs_ref[...]
    for l in range(num_layers):  # static, small; fully unrolled
        acc = jnp.dot(h, b_ref[l], preferred_element_type=jnp.float32)
        acc = acc + jnp.dot(nei, w_ref[l], preferred_element_type=jnp.float32)
        acc = jnp.maximum(acc, 0.0)          # inner relu + outer relu == one relu (f32 VPU)
        h = acc.astype(compute_dtype)
    o_ref[...] = h.astype(o_ref.dtype)


# ---------------------------------------------------------------------------
# Wrapper
# ---------------------------------------------------------------------------
def graphsage_forward(adj_org, params, *, compute_dtype=jnp.bfloat16, tm_pref=1024):
    emb = params["embedding"]                      # (num_node+1, D_in) f32
    layers = params["layers"]                      # [(w_agg, b_self), ...]
    B, N1, N2, K = adj_org.shape
    Kn = K - 1
    D_in = emb.shape[1]
    D_out = layers[-1][1].shape[1]
    L = len(layers)
    M = B * N1 * N2

    # Common feature width = max over all per-layer in/out dims.  Zero-padding to this
    # square width is mathematically exact; we deliberately do NOT round up to 128 lanes
    # (reading 4x zero bytes would tax this memory-bound kernel for small dims).
    dims = [D_in] + [w.shape[0] for (w, _) in layers] + [w.shape[1] for (w, _) in layers]
    Dp = max(dims)

    # --- Embedding gather + neighbor mean kept in XLA (only the consumed rows are
    #     gathered; the Kn-wide block is reduced BEFORE the kernel). ---
    idx = adj_org.reshape(M, K).astype(jnp.int32)
    x_self = jnp.take(emb, idx[:, 0], axis=0)                                   # (M, D_in) f32
    nei = jnp.mean(
        jnp.take(emb, idx[:, 1:].reshape(-1), axis=0).reshape(M, Kn, D_in),
        axis=1)                                                                  # (M, D_in) f32

    # --- Row tile: large, multiple of 16 (bf16 sublane packing), and aim for >= 2 grid
    #     steps so the "parallel" axis can feed both TensorCores on v7x. ---
    tm = max(16, min(tm_pref, _round_up(-(-M // 2), 16)))

    itemsize = jnp.dtype(compute_dtype).itemsize

    def vmem_need(t):
        # double-buffered x_self + nei + output tiles, plus fully-resident weight stacks
        return 2 * 3 * t * Dp * itemsize + 2 * L * Dp * Dp * itemsize

    VMEM_BUDGET = 40 * 1024 * 1024            # conservative: fits v7x's 64 MiB physical VMEM
    while tm > 16 and vmem_need(tm) > VMEM_BUDGET:
        tm = max(16, _round_up(tm // 2, 16))
    # TODO(synk): if L*Dp^2 ever outgrows the budget, switch the weight stacks to a blocked
    #             per-layer BlockSpec instead of fully VMEM-resident.
    vmem_limit = int(min(48 * 1024 * 1024, max(16 * 1024 * 1024, 2 * vmem_need(tm))))

    M_pad = _round_up(M, tm)
    grid = (M_pad // tm,)

    # --- Pad rows/features with zeros (exact) and cast to the compute dtype. ---
    x_self = jnp.pad(x_self, ((0, M_pad - M), (0, Dp - D_in))).astype(compute_dtype)
    nei = jnp.pad(nei, ((0, M_pad - M), (0, Dp - D_in))).astype(compute_dtype)

    w_stack = jnp.stack([
        jnp.pad(w, ((0, Dp - w.shape[0]), (0, Dp - w.shape[1])))
        for (w, _) in layers]).astype(compute_dtype)                             # (L, Dp, Dp)
    b_stack = jnp.stack([
        jnp.pad(b, ((0, Dp - b.shape[0]), (0, Dp - b.shape[1])))
        for (_, b) in layers]).astype(compute_dtype)                             # (L, Dp, Dp)

    cost = pl.CostEstimate(
        flops=4 * M_pad * Dp * Dp * L,                                    # 2 matmuls / layer
        transcendentals=0,
        bytes_accessed=itemsize * (3 * M_pad * Dp + 2 * L * Dp * Dp),
    )

    kernel = functools.partial(fused_graphsage_kernel, num_layers=L)
    out = pl.pallas_call(
        kernel,
        out_shape=jax.ShapeDtypeStruct((M_pad, Dp), compute_dtype),       # bf16 output writes
        grid=grid,
        in_specs=[
            pl.BlockSpec((tm, Dp), lambda i: (i, 0)),
            pl.BlockSpec((tm, Dp), lambda i: (i, 0)),
            # Small constant weights: fully VMEM-resident, not double-buffered.
            pl.BlockSpec(memory_space=pltpu.MemorySpace.VMEM),
            pl.BlockSpec(memory_space=pltpu.MemorySpace.VMEM),
        ],
        out_specs=pl.BlockSpec((tm, Dp), lambda i: (i, 0)),
        compiler_params=pltpu.CompilerParams(
            dimension_semantics=("parallel",),    # shard row tiles across TCs (v7x megacore)
            vmem_limit_bytes=vmem_limit,          # derived from tm/Dp/L, <= 48 MiB
        ),
        cost_estimate=cost,
    )(x_self, nei, w_stack, b_stack)

    return out[:M, :D_out].astype(jnp.float32).reshape(B, N1, N2, D_out)


# ---------------------------------------------------------------------------
# References for the self-test
# ---------------------------------------------------------------------------
def graphsage_reference_f32(adj_org, params):
    """Literal f32 transcription of the PyTorch forward (module semantics)."""
    emb = params["embedding"]
    B, N1, N2, K = adj_org.shape
    D = emb.shape[1]
    x = jnp.take(emb, adj_org.reshape(-1).astype(jnp.int32), axis=0).reshape(B, N1, N2, K, D)
    hidden_self = x[:, :, :, 0, :]
    hidden_nei = x[:, :, :, 1:, :]
    for (w_agg, b_self) in params["layers"]:
        aggr = hidden_nei.mean(axis=3)
        hidden = hidden_self @ b_self + aggr @ w_agg
        hidden_self = jax.nn.relu(jax.nn.relu(hidden))   # SageGCN relu + outer relu
    return hidden_self


def graphsage_reference_matched(adj_org, params, compute_dtype=jnp.bfloat16):
    """Pure-JAX forward mirroring the kernel's mixed-precision numerics."""
    emb = params["embedding"]
    B, N1, N2, K = adj_org.shape
    Kn = K - 1
    D = emb.shape[1]
    M = B * N1 * N2
    idx = adj_org.reshape(M, K).astype(jnp.int32)
    x_self = jnp.take(emb, idx[:, 0], axis=0).astype(compute_dtype)
    nei = jnp.mean(
        jnp.take(emb, idx[:, 1:].reshape(-1), axis=0).reshape(M, Kn, D),
        axis=1).astype(compute_dtype)
    h = x_self
    for (w_agg, b_self) in params["layers"]:
        acc = jnp.dot(h, b_self.astype(compute_dtype), preferred_element_type=jnp.float32)
        acc = acc + jnp.dot(nei, w_agg.astype(compute_dtype), preferred_element_type=jnp.float32)
        h = jnp.maximum(acc, 0.0).astype(compute_dtype)
    D_out = params["layers"][-1][1].shape[1]
    return h.astype(jnp.float32).reshape(B, N1, N2, D_out)


# ---------------------------------------------------------------------------
# Deterministic parameter init (kaiming_uniform-style, matches PyTorch shapes)
# ---------------------------------------------------------------------------
def kaiming_uniform(key, shape):
    fan_in = shape[1]  # PyTorch fan_in for a 2-D weight = size(1)
    bound = (6.0 / fan_in) ** 0.5
    return jax.random.uniform(key, shape, jnp.float32, -bound, bound)


def init_params(key, input_dim, hidden_dim, num_node):
    keys = jax.random.split(key, 2 * len(hidden_dim) + 1)
    emb = kaiming_uniform(keys[0], (num_node + 1, input_dim))
    emb = emb.at[0, :].set(0.0)  # Embedding row 0 zeroed, as in reset_parameters
    layers = []
    d_in = input_dim
    for li, d_out in enumerate(hidden_dim):
        w_agg = kaiming_uniform(keys[1 + 2 * li], (d_in, d_out))   # NeighborAggregator.weight
        b_self = kaiming_uniform(keys[2 + 2 * li], (d_in, d_out))  # SageGCN.b
        layers.append((w_agg, b_self))
        d_in = d_out
    return {"embedding": emb, "layers": layers}


# ---------------------------------------------------------------------------
if __name__ == "__main__":
    # NOTE: the reference module reuses the ORIGINAL neighbor features for every layer,
    # which only type-checks when input_dim == hidden_dim[:-1]; pick dims accordingly.
    B, N1, N2, K = 2, 4, 4, 8
    input_dim = 32
    hidden_dim = [32, 32]
    num_node = 50

    key = jax.random.PRNGKey(0)
    k_param, k_adj = jax.random.split(key)
    params = init_params(k_param, input_dim, hidden_dim, num_node)
    adj_org = jax.random.randint(k_adj, (B, N1, N2, K), 0, num_node + 1, dtype=jnp.int32)

    fwd = jax.jit(graphsage_forward)
    out = jax.block_until_ready(fwd(adj_org, params))
    assert out.shape == (B, N1, N2, hidden_dim[-1])

    ref_matched = graphsage_reference_matched(adj_org, params, jnp.bfloat16)
    ref_f32 = graphsage_reference_f32(adj_org, params)
    assert jnp.allclose(out, ref_matched, rtol=2e-2, atol=2e-2), \
        "mismatch vs bf16-matched reference"
    assert jnp.allclose(out, ref_f32, rtol=5e-2, atol=5e-2), \
        "mismatch vs f32 module-semantics reference"

    print("KERNEL_OK")
</pallas_src>

<mosaic_0001>
module attributes {stable_mosaic.version = 11 : i64} {
  func.func @fused_graphsage_kernel(%arg0: i32, %arg1: memref<16x32xbf16, #tpu.memory_space<vmem>>, %arg2: memref<16x32xbf16, #tpu.memory_space<vmem>>, %arg3: memref<2x32x32xbf16, #tpu.memory_space<vmem>>, %arg4: memref<2x32x32xbf16, #tpu.memory_space<vmem>>, %arg5: memref<16x32xbf16, #tpu.memory_space<vmem>>) attributes {dimension_semantics = [#tpu.dimension_semantics<parallel>], iteration_bounds = array<i64: 2>, scalar_prefetch = 0 : i64, scratch_operands = 0 : i64, tpu.core_type = #tpu.core_type<tc>, window_params = [{transform_indices = @transform_0, window_bounds = array<i64: 16, 32>}, {transform_indices = @transform_1, window_bounds = array<i64: 16, 32>}, {pipeline_mode = #tpu.pipeline_mode<synchronous>, transform_indices = @transform_2, window_bounds = array<i64: 2, 32, 32>}, {pipeline_mode = #tpu.pipeline_mode<synchronous>, transform_indices = @transform_3, window_bounds = array<i64: 2, 32, 32>}, {transform_indices = @transform_4, window_bounds = array<i64: 16, 32>}]} {
    %c0 = arith.constant 0 : index
    %c0_0 = arith.constant 0 : index
    %0 = vector.load %arg2[%c0, %c0_0] : memref<16x32xbf16, #tpu.memory_space<vmem>>, vector<16x32xbf16>
    %c0_1 = arith.constant 0 : index
    %c0_2 = arith.constant 0 : index
    %1 = vector.load %arg1[%c0_1, %c0_2] : memref<16x32xbf16, #tpu.memory_space<vmem>>, vector<16x32xbf16>
    %c0_3 = arith.constant 0 : index
    %c0_4 = arith.constant 0 : index
    %c0_5 = arith.constant 0 : index
    %2 = vector.load %arg4[%c0_3, %c0_4, %c0_5] : memref<2x32x32xbf16, #tpu.memory_space<vmem>>, vector<1x32x32xbf16>
    %3 = vector.shape_cast %2 : vector<1x32x32xbf16> to vector<32x32xbf16>
    %cst = arith.constant dense<0.000000e+00> : vector<16x32xf32>
    %4 = tpu.matmul %1, %3, %cst {dimension_numbers = #tpu.dot_dimension_numbers<[1], [0], [0], [1], [0, 0, 1, 1], [], []>} : vector<16x32xbf16>, vector<32x32xbf16>, vector<16x32xf32> -> vector<16x32xf32>
    %c0_6 = arith.constant 0 : index
    %c0_7 = arith.constant 0 : index
    %c0_8 = arith.constant 0 : index
    %5 = vector.load %arg3[%c0_6, %c0_7, %c0_8] : memref<2x32x32xbf16, #tpu.memory_space<vmem>>, vector<1x32x32xbf16>
    %6 = vector.shape_cast %5 : vector<1x32x32xbf16> to vector<32x32xbf16>
    %cst_9 = arith.constant dense<0.000000e+00> : vector<16x32xf32>
    %7 = tpu.matmul %0, %6, %cst_9 {dimension_numbers = #tpu.dot_dimension_numbers<[1], [0], [0], [1], [0, 0, 1, 1], [], []>} : vector<16x32xbf16>, vector<32x32xbf16>, vector<16x32xf32> -> vector<16x32xf32>
    %8 = arith.addf %4, %7 : vector<16x32xf32>
    %cst_10 = arith.constant 0.000000e+00 : f32
    %9 = vector.broadcast %cst_10 : f32 to vector<16x32xf32>
    %10 = arith.maximumf %8, %9 : vector<16x32xf32>
    %11 = arith.truncf %10 : vector<16x32xf32> to vector<16x32xbf16>
    %c1 = arith.constant 1 : index
    %c0_11 = arith.constant 0 : index
    %c0_12 = arith.constant 0 : index
    %12 = vector.load %arg4[%c1, %c0_11, %c0_12] : memref<2x32x32xbf16, #tpu.memory_space<vmem>>, vector<1x32x32xbf16>
    %13 = vector.shape_cast %12 : vector<1x32x32xbf16> to vector<32x32xbf16>
    %cst_13 = arith.constant dense<0.000000e+00> : vector<16x32xf32>
    %14 = tpu.matmul %11, %13, %cst_13 {dimension_numbers = #tpu.dot_dimension_numbers<[1], [0], [0], [1], [0, 0, 1, 1], [], []>} : vector<16x32xbf16>, vector<32x32xbf16>, vector<16x32xf32> -> vector<16x32xf32>
    %c1_14 = arith.constant 1 : index
    %c0_15 = arith.constant 0 : index
    %c0_16 = arith.constant 0 : index
    %15 = vector.load %arg3[%c1_14, %c0_15, %c0_16] : memref<2x32x32xbf16, #tpu.memory_space<vmem>>, vector<1x32x32xbf16>
    %16 = vector.shape_cast %15 : vector<1x32x32xbf16> to vector<32x32xbf16>
    %cst_17 = arith.constant dense<0.000000e+00> : vector<16x32xf32>
    %17 = tpu.matmul %0, %16, %cst_17 {dimension_numbers = #tpu.dot_dimension_numbers<[1], [0], [0], [1], [0, 0, 1, 1], [], []>} : vector<16x32xbf16>, vector<32x32xbf16>, vector<16x32xf32> -> vector<16x32xf32>
    %18 = arith.addf %14, %17 : vector<16x32xf32>
    %cst_18 = arith.constant 0.000000e+00 : f32
    %19 = vector.broadcast %cst_18 : f32 to vector<16x32xf32>
    %20 = arith.maximumf %18, %19 : vector<16x32xf32>
    %21 = arith.truncf %20 : vector<16x32xf32> to vector<16x32xbf16>
    %c0_19 = arith.constant 0 : index
    %c0_20 = arith.constant 0 : index
    %22 = vector.load %arg5[%c0_19, %c0_20] : memref<16x32xbf16, #tpu.memory_space<vmem>>, vector<16x32xbf16>
    tpu.vector_store %arg5[%c0_19, %c0_20], %21 {strides = array<i32>} : memref<16x32xbf16, #tpu.memory_space<vmem>>, vector<16x32xbf16>,
    return
  }
  func.func @transform_0(%arg0: i32) -> (i32, i32) {
    %c0_i32 = arith.constant 0 : i32
    %c0_i32_0 = arith.constant 0 : i32
    return %arg0, %c0_i32 : i32, i32
  }
  func.func @transform_1(%arg0: i32) -> (i32, i32) {
    %c0_i32 = arith.constant 0 : i32
    %c0_i32_0 = arith.constant 0 : i32
    return %arg0, %c0_i32 : i32, i32
  }
  func.func @transform_2(%arg0: i32) -> (i32, i32, i32) {
    %c0_i32 = arith.constant 0 : i32
    %c0_i32_0 = arith.constant 0 : i32
    %c0_i32_1 = arith.constant 0 : i32
    %c0_i32_2 = arith.constant 0 : i32
    return %c0_i32, %c0_i32_0, %c0_i32_1 : i32, i32, i32
  }
  func.func @transform_3(%arg0: i32) -> (i32, i32, i32) {
    %c0_i32 = arith.constant 0 : i32
    %c0_i32_0 = arith.constant 0 : i32
    %c0_i32_1 = arith.constant 0 : i32
    %c0_i32_2 = arith.constant 0 : i32
    return %c0_i32, %c0_i32_0, %c0_i32_1 : i32, i32, i32
  }
  func.func @transform_4(%arg0: i32) -> (i32, i32) {
    %c0_i32 = arith.constant 0 : i32
    %c0_i32_0 = arith.constant 0 : i32
    return %arg0, %c0_i32 : i32, i32
  }
}

</mosaic_0001>

<bundles_post_ra>
// kernel: graphsage_forward.1
= control target key start
LH: loop header
LB: loop body
LE: loop exit
PB: predicated region body
PF: predicated region fallthrough
CT: control target
= control target key end

     0   :  { %s708_s15 = smov 0   ;;  %s765_s0 = inlined_call_operand.vmem [shape: bf16[32,32], index: 0, kind: input, shape index: {}]   ;;  %s766_s1 = inlined_call_operand.vmem [shape: bf16[32,32], index: 1, kind: input, shape index: {}]   ;;  %s767_s2 = inlined_call_operand.vmem [shape: bf16[2,32,32], index: 2, kind: input, shape index: {}]   ;;  %s768_s3 = inlined_call_operand.vmem [shape: bf16[2,32,32], index: 3, kind: input, shape index: {}]   ;;  %s769_s4 = inlined_call_operand.vmem [shape: bf16[32,32], index: 4, kind: output, shape index: {}]  }
   0x1 LB: > { %s562_s16 = sadd.s32 4294967295, %s679_s15   ;;  %p566_p0 = scmp.ge.s32.totalorder %s679_s15, 1  ;;  %s679_s15 = sphi %s708_s15, %s14_s15  }
   0x2   : > { %p174_p1 = scmp.lt.s32.totalorder %s679_s15, 3 }
   0x4   : > { %p175_p2 = pnand %p566_p0, %p174_p1 }
   0x5   : > { %v663_v0 = vld [vmem:[%s767_s2] sm:$0xff] (!%p175_p2)   ;;  %v681_v1 = vmov (!%p175_p2), 0.0   ;;  %v664_v2 = vld [vmem:[%s767_s2 + $0x8] sm:$0xff] (!%p175_p2)   ;;  %vm682_vm0 = vmmov (!%p175_p2), 0   ;;  %s567_s21 = sshll.u32 (!%p175_p2), %s562_s16, 1  ;;  %v669_v3 = vld [vmem:[%s767_s2 + $0x10] sm:$0xff] (!%p175_p2)  }
   0x6   : > { %178 = sbr.rel (%p175_p2) target bundleno = 466 (0x1d2), region = 36  ;;  %613 = vmatprep.subr.bf16.mxu0 (!%p175_p2), %v681_v1  ;;  %629 = vmatprep.subr.bf16.mxu1 (!%p175_p2), %v681_v1  ;;  %p206_p3 = scmp.lt.s32.totalorder (!%p175_p2), %s567_s21, 3  ;;  %v670_v4 = vld [vmem:[%s767_s2 + $0x18] sm:$0xff] (!%p175_p2)   ;;  %vm253_vm1 = vcmask (!%p175_p2), 261120   ;;  %v666_v5 = vld [vmem:[%s768_s3] sm:$0xff] (!%p175_p2)   ;;  %v671_v7 = vld [vmem:[%s768_s3 + $0x10] sm:$0xff] (!%p175_p2)  }
   0x7   : > { %614 = vmatpush3.bf16.msra.mxu0 (!%p175_p2), %v663_v0  ;;  %617 = vmatprep.mubr.msk.bf16.mxu0 (!%p175_p2), %vm682_vm0, %v681_v1  ;;  %v667_v8 = vld [vmem:[%s768_s3 + $0x8] sm:$0xff] (!%p175_p2)   ;;  %v672_v10 = vld [vmem:[%s768_s3 + $0x18] sm:$0xff] (!%p175_p2)   ;;  %vm491_vm2 = vcmask (!%p175_p2), 257024  }
   0x8   : > { %615 = vmatprep.subr.bf16.mxu0 (!%p175_p2), %v681_v1  ;;  %633 = vmatprep.mubr.msk.bf16.mxu1 (!%p175_p2), %vm682_vm0, %v681_v1 }
   0x9   : > { %630 = vmatpush3.bf16.msra.mxu1 (!%p175_p2), %v669_v3 }
   0xa   : > { %631 = vmatprep.subr.bf16.mxu1 (!%p175_p2), %v681_v1 }
   0xb   : > { %616 = vmatpush3.bf16.msra.mxu0 (!%p175_p2), %v664_v2 }
   0xc   : > { %621 = vmatprep.subr.bf16.mxu0 (!%p175_p2), %v681_v1 }
   0xd   : > { %s771_s21 = smov (!%p206_p3, %s567_s21), 3  ;;  %632 = vmatpush3.bf16.msra.mxu1 %v670_v4 }
   0xe   : > { %s727_s24 = sshll.u32 %s771_s21, 2  ;;  %637 = vmatprep.subr.bf16.mxu1 %v681_v1 }
   0xf   : > { %s215_s29 = scalar_lea.vmem %s766_s1, %s727_s24  ;;  %s209_s8 = scalar_lea.vmem %s765_s0, %s727_s24 }
  0x10   : > { %v665_v6 = vld [vmem:[%s215_s29] sm:$0xff]   ;;  %s221_s18 = scalar_lea.vmem %s769_s4, %s727_s24 }
  0x11   : > { %618 = vmatmul.mubr.msk.bf16.vlgmr.msra.gmra.mrb[0].mxu0 %vm253_vm1, %v665_v6  ;;  %634 = vmatmul.mubr.msk.bf16.vlgmr.msra.gmra.mrb[0].mxu1 %vm253_vm1, %v665_v6  ;;  %v668_v9 = vld [vmem:[%s209_s8] sm:$0xff]  }
  0x12   : > { %622 = vmatpush3.bf16.msra.mxu0 %v666_v5  ;;  %625 = vmatprep.mubr.msk.bf16.mxu0 %vm682_vm0, %v681_v1 }
  0x13   : > { %623 = vmatprep.subr.bf16.mxu0 %v681_v1  ;;  %638 = vmatpush3.bf16.msra.mxu1 %v671_v7 }
  0x14   : > { %641 = vmatprep.mubr.msk.bf16.mxu1 %vm682_vm0, %v681_v1  ;;  %639 = vmatprep.subr.bf16.mxu1 %v681_v1 }
  0x16   : > { %624 = vmatpush3.bf16.msra.mxu0 %v667_v8 }
  0x17   : > { %640 = vmatpush3.bf16.msra.mxu1 %v672_v10 }
  0x1d   : > { %626 = vmatmul.mubr.msk.bf16.vlgmr.msra.gmra.mrb[0].mxu0 %vm253_vm1, %v668_v9 }
  0xf0   : > { %v352_v11 = vpop.f32.mrb[0].mxu0 }
  0xf1   : > { %v627_v12 = vpop.f32.mrb[1].mxu0  ;;  %v359_v14 = vmax.f32 %v352_v11, 0.0 }
  0xf2   : > { %v355_v13 = vpop.f32.mrb[2].mxu0 }
  0xf3   : > { %v360_v15 = vmax.f32 %v355_v13, 0.0  ;;  %v628_v16 = vpop.f32.mrb[3].mxu0 }
  0xf5   : > { %v361_v17 = vpack.c.bf16 %v360_v15, %v359_v14 }
  0xf7   : > { %642 = vmatmul.mubr.msk.bf16.vlgmr.msra.gmra.mrb[0].mxu1 %vm253_vm1, %v361_v17 }
 0x1ca   : > { %v474_v18 = vpop.f32.mrb[0].mxu1 }
 0x1cb   : > { %v481_v19 = vmax.f32 %v474_v18, 0.0  ;;  %v643_v20 = vpop.f32.mrb[1].mxu1 }
 0x1cc   : > { %v477_v21 = vpop.f32.mrb[2].mxu1 }
 0x1cd   : > { %v599_v22 = vpack.c.bf16 %v481_v19, %v481_v19  ;;  %v482_v23 = vmax.f32 %v477_v21, 0.0  ;;  %v644_v24 = vpop.f32.mrb[3].mxu1 }
 0x1cf   : > { %492 = vst.msk [vmem:[%s221_s18] sm:$0xf] %vm491_vm2, %v599_v22  ;;  %v600_v25 = vpack.c.bf16 %v482_v23, %v482_v23 }
 0x1d1   : > { %493 = vst.msk [vmem:[%s221_s18 + $0x4] sm:$0xf] %vm491_vm2, %v600_v25 }
 0x1d2 PF: > { %s14_s15 = sadd.s32 1, %s679_s15  }
 0x1d3   : > { %p11_p4 = scmp.ge.s32.totalorder %s14_s15, 4  }
 0x1d5   :  { %13 = sbr.rel (!%p11_p4) target bundleno = 1 (0x1), region = 71 }

</bundles_post_ra>
